<compile_context>
chip_gen: v7x
topology: tpu7x:2x2x1
jax: 0.10.0
libtpu: 0.0.40
codegen_flags: <defaults>
</compile_context>

<pallas_src>
import functools
import math

import jax
import jax.numpy as jnp
from jax.experimental import pallas as pl
from jax.experimental.pallas import tpu as pltpu


def _dice_kernel(logits_ref, tgt_ref, out_ref,
                 inter_ref, psum_ref, tsum_ref, *,
                 num_classes, n_tile, acc_rows, s_total, s_per_split,
                 targets_are_labels, needs_mask):
    s = pl.program_id(2)

    @pl.when(s == 0)
    def _init():
        inter_ref[...] = jnp.zeros_like(inter_ref)
        psum_ref[...] = jnp.zeros_like(psum_ref)
        tsum_ref[...] = jnp.zeros_like(tsum_ref)

    c = num_classes
    # Load in native dtype, cast on the vreg (halves HBM traffic for bf16).
    x = logits_ref[0].astype(jnp.float32)                     # (C, n_tile, 128)

    # Softmax over the class axis.  C is the *leading* (non-vreg) dim, so the
    # max/sum are C-1 elementwise VPU ops on full (n_tile, 128) vregs (no XLU).
    m = jnp.max(x, axis=0, keepdims=True)                     # (1, n_tile, 128)
    e = jnp.exp(x - m)                                        # EUP
    denom = jnp.sum(e, axis=0, keepdims=True)
    r = pl.reciprocal(denom, approx=True)                     # EUP slot (cheap)
    r = r * (2.0 - denom * r)                                 # 1 Newton step -> ~f32 exact
    probs = e * r                                             # (C, n_tile, 128)

    if targets_are_labels:
        # One-hot built in-register from int labels: no dense target HBM read.
        labels = tgt_ref[0].astype(jnp.int32)                 # (1, n_tile, 128)
        cls = jax.lax.broadcasted_iota(jnp.int32, (c, n_tile, 128), 0)
        t = (labels == cls).astype(jnp.float32)               # (C, n_tile, 128)
    else:
        t = tgt_ref[0].astype(jnp.float32)                    # (C, n_tile, 128)

    def _vreg_sum(v):
        # (C, n_tile, 128) -> (C, acc_rows, 128): sum whole vregs (VPU adds
        # only); no cross-lane/cross-sublane movement until the JAX epilogue.
        if n_tile == acc_rows:
            return v
        return jnp.sum(v.reshape(c, n_tile // acc_rows, acc_rows, 128), axis=1)

    def _accumulate(pv, tv):
        inter_ref[...] += _vreg_sum(pv * tv)
        psum_ref[...] += _vreg_sum(pv)
        tsum_ref[...] += _vreg_sum(tv)

    if needs_mask:
        # Only the tile that overruns the true spatial extent pays for masking.
        p = pl.program_id(1)
        cols = n_tile * 128
        start = (p * s_per_split + s) * cols
        is_tail = start + cols > s_total

        @pl.when(is_tail)
        def _masked():
            row = jax.lax.broadcasted_iota(jnp.int32, (1, n_tile, 128), 1)
            lane = jax.lax.broadcasted_iota(jnp.int32, (1, n_tile, 128), 2)
            valid = (start + row * 128 + lane) < s_total
            _accumulate(jnp.where(valid, probs, 0.0), jnp.where(valid, t, 0.0))

        @pl.when(jnp.logical_not(is_tail))
        def _clean():
            _accumulate(probs, t)
    else:
        _accumulate(probs, t)

    @pl.when(s == pl.num_programs(2) - 1)
    def _finalize():
        # Emit lane-dense per-(batch, split) partial sums; the (acc_rows, 128)
        # collapse and the dice ratio are done once in JAX (negligible).
        out_ref[0, 0:c] = inter_ref[...]
        out_ref[0, c:2 * c] = psum_ref[...]
        out_ref[0, 2 * c:3 * c] = tsum_ref[...]


def _pick_tiling(num_classes, s128, logits_itemsize, tgt_cols, tgt_itemsize,
                 dense, max_tile_cols=None):
    """Generation-aware spatial tile (in rows of 128 lanes) + VMEM limit."""
    try:
        vmem_cap = pltpu.get_tpu_info().vmem_capacity_bytes
    except Exception:
        vmem_cap = 64 << 20
    if vmem_cap >= (100 << 20):          # v5e / v6e: 128 MiB physical VMEM
        vmem_limit = 96 << 20
        max_cols = (128 if dense else 256) * 1024
    else:                                # v7x: 64 MiB physical VMEM
        vmem_limit = 48 << 20
        max_cols = (64 if dense else 128) * 1024
    # Per spatial column: double-buffered inputs + ~5 f32 block temporaries
    # (x, e, probs, t, probs*t) all scale with the tile.
    per_col = (2 * num_classes * logits_itemsize
               + 2 * tgt_cols * tgt_itemsize
               + 5 * num_classes * 4)
    budget_cols = ((vmem_limit // 2) // per_col) // 1024 * 1024
    cols = max(1024, min(max_cols, budget_cols))
    if max_tile_cols is not None:
        cols = max(128, min(cols, int(max_tile_cols)))
    n_tile = cols // 128
    if s128 >= 8:
        n_tile = max(8, (min(n_tile, s128) // 8) * 8)   # multiple of 8 sublanes
        acc_rows = 8
    else:
        n_tile = s128                                   # full (tiny) dim
        acc_rows = n_tile
    return n_tile, acc_rows, vmem_limit


def _prep_spatial(x, b, cdim, s):
    """(b, cdim, *spatial) -> (b, cdim, S128, 128), zero-padding S to a
    multiple of 128 only when needed (padded columns are masked in-kernel)."""
    x = x.reshape(b, cdim, s)
    pad = (-s) % 128
    if pad:
        x = jnp.pad(x, ((0, 0), (0, 0), (0, pad)))
    return x.reshape(b, cdim, (s + pad) // 128, 128)


def _dice_pallas(logits4, tgt4, *, smooth, num_classes, s_total,
                 targets_are_labels, max_tile_cols=None):
    b, _, s128, _ = logits4.shape
    c = num_classes
    dense = not targets_are_labels
    tgt_cols = c if dense else 1

    n_tile, acc_rows, vmem_limit = _pick_tiling(
        c, s128, logits4.dtype.itemsize, tgt_cols, tgt4.dtype.itemsize,
        dense, max_tile_cols)

    nb = pl.cdiv(s128, n_tile)                    # total spatial blocks
    # If B == 1, split the spatial range over a second parallel grid axis so a
    # lone batch still uses both v7x TensorCores.
    n_splits = 2 if (b == 1 and nb >= 2 and nb % 2 == 0) else 1
    # TODO(synk): odd block counts at B == 1 fall back to a single split.
    s_per_split = nb // n_splits
    needs_mask = (nb * n_tile * 128) > s_total

    kernel = functools.partial(
        _dice_kernel,
        num_classes=c, n_tile=n_tile, acc_rows=acc_rows, s_total=s_total,
        s_per_split=s_per_split, targets_are_labels=targets_are_labels,
        needs_mask=needs_mask)

    def in_map(bb, p, s):
        return (bb, 0, p * s_per_split + s, 0)

    out = pl.pallas_call(
        kernel,
        out_shape=jax.ShapeDtypeStruct((b * n_splits, 3 * c, acc_rows, 128),
                                       jnp.float32),
        grid_spec=pltpu.PrefetchScalarGridSpec(
            num_scalar_prefetch=0,
            grid=(b, n_splits, s_per_split),
            in_specs=[
                pl.BlockSpec((1, c, n_tile, 128), in_map),
                pl.BlockSpec((1, tgt_cols, n_tile, 128), in_map),
            ],
            out_specs=pl.BlockSpec((1, 3 * c, acc_rows, 128),
                                   lambda bb, p, s: (bb * n_splits + p, 0, 0, 0)),
            scratch_shapes=[
                pltpu.VMEM((c, acc_rows, 128), jnp.float32),   # intersection
                pltpu.VMEM((c, acc_rows, 128), jnp.float32),   # sum(probs)
                pltpu.VMEM((c, acc_rows, 128), jnp.float32),   # sum(targets)
            ],
        ),
        compiler_params=pltpu.CompilerParams(
            dimension_semantics=("parallel", "parallel", "arbitrary"),
            vmem_limit_bytes=vmem_limit,
        ),
    )(logits4, tgt4)

    # Tiny JAX epilogue: collapse splits / sublanes / lanes, then dice + mean.
    sums = out.reshape(b, n_splits, 3, c, acc_rows, 128).sum(axis=(1, 4, 5))
    inter, psum, tsum = sums[:, 0], sums[:, 1], sums[:, 2]          # (B, C)
    dice = (2.0 * inter + smooth) / (psum + tsum + smooth)
    return 1.0 - jnp.mean(jnp.sum(dice, axis=1) / c)


def dice_loss(logits, targets, smooth=1e-6, max_tile_cols=None):
    """Matches DiceLoss.forward: dense `targets` with the same shape as
    `logits`.  Targets may be bf16 / int8 one-hot (cast on-vreg in-kernel)."""
    b, c = logits.shape[0], logits.shape[1]
    s = math.prod(logits.shape[2:])
    logits4 = _prep_spatial(logits, b, c, s)
    targets4 = _prep_spatial(targets, b, c, s)
    return _dice_pallas(logits4, targets4, smooth=smooth, num_classes=c,
                        s_total=s, targets_are_labels=False,
                        max_tile_cols=max_tile_cols)


def dice_loss_from_labels(logits, labels, smooth=1e-6, max_tile_cols=None):
    """Bandwidth-optimized path: integer class labels (B, *spatial); the
    one-hot is built in-register (no dense target read from HBM)."""
    b, c = logits.shape[0], logits.shape[1]
    s = math.prod(logits.shape[2:])
    logits4 = _prep_spatial(logits, b, c, s)
    labels4 = _prep_spatial(labels, b, 1, s)        # native int dtype, no copy
    return _dice_pallas(logits4, labels4, smooth=smooth, num_classes=c,
                        s_total=s, targets_are_labels=True,
                        max_tile_cols=max_tile_cols)


if __name__ == "__main__":
    key = jax.random.PRNGKey(0)
    smooth = 1e-6

    def ref_loss(logits, targets):
        b, c = logits.shape[0], logits.shape[1]
        probs = jax.nn.softmax(logits, axis=1).reshape(b, c, -1)
        t = targets.reshape(b, c, -1)
        inter = jnp.sum(probs * t, axis=2)
        dice = (2.0 * inter + smooth) / (
            jnp.sum(probs, axis=2) + jnp.sum(t, axis=2) + smooth)
        return 1.0 - jnp.mean(jnp.sum(dice, axis=1) / c)

    # Case 1: B=2, C=4, D=7 -> S = 1792 = 14*128; n_tile=8 gives a ragged last
    # tile (exercises the pl.when-gated tail mask) and B=2 uses batch megacore.
    k1, k2, k3, k4 = jax.random.split(key, 4)
    B, C, D, H, W = 2, 4, 7, 16, 16
    logits = jax.random.normal(k1, (B, C, D, H, W), dtype=jnp.float32)
    labels = jax.random.randint(k2, (B, D, H, W), 0, C)
    targets = jax.nn.one_hot(labels, C, axis=1, dtype=jnp.float32)

    ref1 = ref_loss(logits, targets)
    got_dense = jax.block_until_ready(dice_loss(logits, targets))
    got_dense_bf16 = jax.block_until_ready(
        dice_loss(logits, targets.astype(jnp.bfloat16)))     # half the tgt bytes
    got_labels = jax.block_until_ready(dice_loss_from_labels(logits, labels))
    assert jnp.allclose(got_dense, ref1, atol=1e-5), (got_dense, ref1)
    assert jnp.allclose(got_dense_bf16, ref1, atol=1e-5), (got_dense_bf16, ref1)
    assert jnp.allclose(got_labels, ref1, atol=1e-5), (got_labels, ref1)

    # Case 2: B=1 -> spatial range split across the 2-wide parallel grid axis
    # (no idle v7x TensorCore).  S = 2048 = 16*128, tile cap 1024 -> 2 blocks.
    B, C, D, H, W = 1, 3, 8, 16, 16
    logits = jax.random.normal(k3, (B, C, D, H, W), dtype=jnp.float32)
    labels = jax.random.randint(k4, (B, D, H, W), 0, C)
    targets = jax.nn.one_hot(labels, C, axis=1, dtype=jnp.float32)
    ref2 = ref_loss(logits, targets)
    got2l = jax.block_until_ready(
        dice_loss_from_labels(logits, labels, max_tile_cols=1024))
    got2d = jax.block_until_ready(dice_loss(logits, targets, max_tile_cols=1024))
    assert jnp.allclose(got2l, ref2, atol=1e-5), (got2l, ref2)
    assert jnp.allclose(got2d, ref2, atol=1e-5), (got2d, ref2)

    # Case 3: spatial size not a multiple of 128 -> wrapper zero-pads and the
    # kernel masks the padded columns.  S = 300 -> padded to 384.
    k5, k6 = jax.random.split(k1)
    B, C, D, H, W = 1, 3, 3, 10, 10
    logits = jax.random.normal(k5, (B, C, D, H, W), dtype=jnp.float32)
    labels = jax.random.randint(k6, (B, D, H, W), 0, C)
    targets = jax.nn.one_hot(labels, C, axis=1, dtype=jnp.float32)
    ref3 = ref_loss(logits, targets)
    got3 = jax.block_until_ready(dice_loss(logits, targets))
    assert jnp.allclose(got3, ref3, atol=1e-5), (got3, ref3)

    print("KERNEL_OK")
</pallas_src>

<mosaic_0001>
module attributes {stable_mosaic.version = 11 : i64} {
  func.func @_dice_kernel(%arg0: i32, %arg1: i32, %arg2: i32, %arg3: memref<1x4x8x128xf32, #tpu.memory_space<vmem>>, %arg4: memref<1x4x8x128xf32, #tpu.memory_space<vmem>>, %arg5: memref<1x12x8x128xf32, #tpu.memory_space<vmem>>, %arg6: memref<4x8x128xf32, #tpu.memory_space<vmem>>, %arg7: memref<4x8x128xf32, #tpu.memory_space<vmem>>, %arg8: memref<4x8x128xf32, #tpu.memory_space<vmem>>) attributes {dimension_semantics = [#tpu.dimension_semantics<parallel>, #tpu.dimension_semantics<parallel>, #tpu.dimension_semantics<arbitrary>], iteration_bounds = array<i64: 2, 1, 2>, scalar_prefetch = 0 : i64, scratch_operands = 3 : i64, tpu.core_type = #tpu.core_type<tc>, window_params = [{transform_indices = @transform_0, window_bounds = array<i64: 1, 4, 8, 128>}, {transform_indices = @transform_1, window_bounds = array<i64: 1, 4, 8, 128>}, {transform_indices = @transform_2, window_bounds = array<i64: 1, 12, 8, 128>}]} {
    %c0_i32 = arith.constant 0 : i32
    %0 = arith.cmpi eq, %arg2, %c0_i32 : i32
    %1 = arith.extui %0 : i1 to i32
    %c0_i32_0 = arith.constant 0 : i32
    %2 = arith.cmpi ne, %1, %c0_i32_0 : i32
    scf.if %2 {
      %cst_14 = arith.constant 0.000000e+00 : f32
      %34 = vector.broadcast %cst_14 : f32 to vector<4x8x128xf32>
      %c0_15 = arith.constant 0 : index
      %c0_16 = arith.constant 0 : index
      %c0_17 = arith.constant 0 : index
      %35 = vector.load %arg6[%c0_15, %c0_16, %c0_17] : memref<4x8x128xf32, #tpu.memory_space<vmem>>, vector<4x8x128xf32>
      tpu.vector_store %arg6[%c0_15, %c0_16, %c0_17], %34 {strides = array<i32>} : memref<4x8x128xf32, #tpu.memory_space<vmem>>, vector<4x8x128xf32>,
      %cst_18 = arith.constant 0.000000e+00 : f32
      %36 = vector.broadcast %cst_18 : f32 to vector<4x8x128xf32>
      %c0_19 = arith.constant 0 : index
      %c0_20 = arith.constant 0 : index
      %c0_21 = arith.constant 0 : index
      %37 = vector.load %arg7[%c0_19, %c0_20, %c0_21] : memref<4x8x128xf32, #tpu.memory_space<vmem>>, vector<4x8x128xf32>
      tpu.vector_store %arg7[%c0_19, %c0_20, %c0_21], %36 {strides = array<i32>} : memref<4x8x128xf32, #tpu.memory_space<vmem>>, vector<4x8x128xf32>,
      %cst_22 = arith.constant 0.000000e+00 : f32
      %38 = vector.broadcast %cst_22 : f32 to vector<4x8x128xf32>
      %c0_23 = arith.constant 0 : index
      %c0_24 = arith.constant 0 : index
      %c0_25 = arith.constant 0 : index
      %39 = vector.load %arg8[%c0_23, %c0_24, %c0_25] : memref<4x8x128xf32, #tpu.memory_space<vmem>>, vector<4x8x128xf32>
      tpu.vector_store %arg8[%c0_23, %c0_24, %c0_25], %38 {strides = array<i32>} : memref<4x8x128xf32, #tpu.memory_space<vmem>>, vector<4x8x128xf32>,
    } else {
    }
    %c0 = arith.constant 0 : index
    %c0_1 = arith.constant 0 : index
    %c0_2 = arith.constant 0 : index
    %c0_3 = arith.constant 0 : index
    %3 = vector.load %arg3[%c0, %c0_1, %c0_2, %c0_3] : memref<1x4x8x128xf32, #tpu.memory_space<vmem>>, vector<1x4x8x128xf32>
    %4 = vector.shape_cast %3 : vector<1x4x8x128xf32> to vector<4x8x128xf32>
    %cst = arith.constant dense<0xFF800000> : vector<8x128xf32>
    %5 = vector.multi_reduction <maximumf>, %4, %cst [0] : vector<4x8x128xf32> to vector<8x128xf32>
    %6 = vector.shape_cast %5 : vector<8x128xf32> to vector<1x8x128xf32>
    %7 = vector.broadcast %6 : vector<1x8x128xf32> to vector<4x8x128xf32>
    %8 = arith.subf %4, %7 : vector<4x8x128xf32>
    %9 = math.exp %8 : vector<4x8x128xf32>
    %cst_4 = arith.constant dense<0.000000e+00> : vector<8x128xf32>
    %10 = vector.multi_reduction <add>, %9, %cst_4 [0] : vector<4x8x128xf32> to vector<8x128xf32>
    %11 = vector.shape_cast %10 : vector<8x128xf32> to vector<1x8x128xf32>
    %12 = tpu.reciprocal %11 {approx = true} : vector<1x8x128xf32> -> vector<1x8x128xf32>
    %13 = arith.mulf %11, %12 : vector<1x8x128xf32>
    %cst_5 = arith.constant 2.000000e+00 : f32
    %14 = vector.broadcast %cst_5 : f32 to vector<1x8x128xf32>
    %15 = arith.subf %14, %13 : vector<1x8x128xf32>
    %16 = arith.mulf %12, %15 : vector<1x8x128xf32>
    %17 = vector.broadcast %16 : vector<1x8x128xf32> to vector<4x8x128xf32>
    %18 = arith.mulf %9, %17 : vector<4x8x128xf32>
    %c0_6 = arith.constant 0 : index
    %c0_7 = arith.constant 0 : index
    %c0_8 = arith.constant 0 : index
    %c0_9 = arith.constant 0 : index
    %19 = vector.load %arg4[%c0_6, %c0_7, %c0_8, %c0_9] : memref<1x4x8x128xf32, #tpu.memory_space<vmem>>, vector<1x4x8x128xf32>
    %20 = vector.shape_cast %19 : vector<1x4x8x128xf32> to vector<4x8x128xf32>
    %c2_i32 = arith.constant 2 : i32
    %21 = arith.muli %arg1, %c2_i32 : i32
    %22 = arith.addi %21, %arg2 : i32
    %c1024_i32 = arith.constant 1024 : i32
    %23 = arith.muli %22, %c1024_i32 : i32
    %c1024_i32_10 = arith.constant 1024 : i32
    %24 = arith.addi %23, %c1024_i32_10 : i32
    %c1792_i32 = arith.constant 1792 : i32
    %25 = arith.cmpi sgt, %24, %c1792_i32 : i32
    %26 = arith.extui %25 : i1 to i32
    %c0_i32_11 = arith.constant 0 : i32
    %27 = arith.cmpi ne, %26, %c0_i32_11 : i32
    scf.if %27 {
      %34 = tpu.iota {dimensions = array<i32: 1>} : vector<1x8x128xi32>
      %35 = tpu.iota {dimensions = array<i32: 2>} : vector<1x8x128xi32>
      %c128_i32 = arith.constant 128 : i32
      %36 = vector.broadcast %c128_i32 : i32 to vector<1x8x128xi32>
      %37 = arith.muli %34, %36 : vector<1x8x128xi32>
      %38 = vector.broadcast %23 : i32 to vector<1x8x128xi32>
      %39 = arith.addi %38, %37 : vector<1x8x128xi32>
      %40 = arith.addi %39, %35 : vector<1x8x128xi32>
      %c1792_i32_14 = arith.constant 1792 : i32
      %41 = vector.broadcast %c1792_i32_14 : i32 to vector<1x8x128xi32>
      %42 = arith.cmpi slt, %40, %41 : vector<1x8x128xi32>
      %cst_15 = arith.constant 0.000000e+00 : f32
      %43 = vector.shape_cast %42 : vector<1x8x128xi1> to vector<1x8x128xi1>
      %44 = vector.broadcast %43 : vector<1x8x128xi1> to vector<4x8x128xi1>
      %45 = vector.broadcast %cst_15 : f32 to vector<4x8x128xf32>
      %46 = arith.select %44, %18, %45 : vector<4x8x128xi1>, vector<4x8x128xf32>
      %cst_16 = arith.constant 0.000000e+00 : f32
      %47 = vector.shape_cast %42 : vector<1x8x128xi1> to vector<1x8x128xi1>
      %48 = vector.broadcast %47 : vector<1x8x128xi1> to vector<4x8x128xi1>
      %49 = vector.broadcast %cst_16 : f32 to vector<4x8x128xf32>
      %50 = arith.select %48, %20, %49 : vector<4x8x128xi1>, vector<4x8x128xf32>
      %c0_17 = arith.constant 0 : index
      %c0_18 = arith.constant 0 : index
      %c0_19 = arith.constant 0 : index
      %51 = vector.load %arg6[%c0_17, %c0_18, %c0_19] : memref<4x8x128xf32, #tpu.memory_space<vmem>>, vector<4x8x128xf32>
      %52 = arith.mulf %46, %50 : vector<4x8x128xf32>
      %53 = arith.addf %51, %52 : vector<4x8x128xf32>
      %c0_20 = arith.constant 0 : index
      %c0_21 = arith.constant 0 : index
      %c0_22 = arith.constant 0 : index
      %54 = vector.load %arg6[%c0_20, %c0_21, %c0_22] : memref<4x8x128xf32, #tpu.memory_space<vmem>>, vector<4x8x128xf32>
      tpu.vector_store %arg6[%c0_20, %c0_21, %c0_22], %53 {strides = array<i32>} : memref<4x8x128xf32, #tpu.memory_space<vmem>>, vector<4x8x128xf32>,
      %c0_23 = arith.constant 0 : index
      %c0_24 = arith.constant 0 : index
      %c0_25 = arith.constant 0 : index
      %55 = vector.load %arg7[%c0_23, %c0_24, %c0_25] : memref<4x8x128xf32, #tpu.memory_space<vmem>>, vector<4x8x128xf32>
      %56 = arith.addf %55, %46 : vector<4x8x128xf32>
      %c0_26 = arith.constant 0 : index
      %c0_27 = arith.constant 0 : index
      %c0_28 = arith.constant 0 : index
      %57 = vector.load %arg7[%c0_26, %c0_27, %c0_28] : memref<4x8x128xf32, #tpu.memory_space<vmem>>, vector<4x8x128xf32>
      tpu.vector_store %arg7[%c0_26, %c0_27, %c0_28], %56 {strides = array<i32>} : memref<4x8x128xf32, #tpu.memory_space<vmem>>, vector<4x8x128xf32>,
      %c0_29 = arith.constant 0 : index
      %c0_30 = arith.constant 0 : index
      %c0_31 = arith.constant 0 : index
      %58 = vector.load %arg8[%c0_29, %c0_30, %c0_31] : memref<4x8x128xf32, #tpu.memory_space<vmem>>, vector<4x8x128xf32>
      %59 = arith.addf %58, %50 : vector<4x8x128xf32>
      %c0_32 = arith.constant 0 : index
      %c0_33 = arith.constant 0 : index
      %c0_34 = arith.constant 0 : index
      %60 = vector.load %arg8[%c0_32, %c0_33, %c0_34] : memref<4x8x128xf32, #tpu.memory_space<vmem>>, vector<4x8x128xf32>
      tpu.vector_store %arg8[%c0_32, %c0_33, %c0_34], %59 {strides = array<i32>} : memref<4x8x128xf32, #tpu.memory_space<vmem>>, vector<4x8x128xf32>,
    } else {
    }
    %true = arith.constant true
    %28 = arith.xori %25, %true : i1
    %29 = arith.extui %28 : i1 to i32
    %c0_i32_12 = arith.constant 0 : i32
    %30 = arith.cmpi ne, %29, %c0_i32_12 : i32
    scf.if %30 {
      %c0_14 = arith.constant 0 : index
      %c0_15 = arith.constant 0 : index
      %c0_16 = arith.constant 0 : index
      %34 = vector.load %arg6[%c0_14, %c0_15, %c0_16] : memref<4x8x128xf32, #tpu.memory_space<vmem>>, vector<4x8x128xf32>
      %35 = arith.mulf %18, %20 : vector<4x8x128xf32>
      %36 = arith.addf %34, %35 : vector<4x8x128xf32>
      %c0_17 = arith.constant 0 : index
      %c0_18 = arith.constant 0 : index
      %c0_19 = arith.constant 0 : index
      %37 = vector.load %arg6[%c0_17, %c0_18, %c0_19] : memref<4x8x128xf32, #tpu.memory_space<vmem>>, vector<4x8x128xf32>
      tpu.vector_store %arg6[%c0_17, %c0_18, %c0_19], %36 {strides = array<i32>} : memref<4x8x128xf32, #tpu.memory_space<vmem>>, vector<4x8x128xf32>,
      %c0_20 = arith.constant 0 : index
      %c0_21 = arith.constant 0 : index
      %c0_22 = arith.constant 0 : index
      %38 = vector.load %arg7[%c0_20, %c0_21, %c0_22] : memref<4x8x128xf32, #tpu.memory_space<vmem>>, vector<4x8x128xf32>
      %39 = arith.addf %38, %18 : vector<4x8x128xf32>
      %c0_23 = arith.constant 0 : index
      %c0_24 = arith.constant 0 : index
      %c0_25 = arith.constant 0 : index
      %40 = vector.load %arg7[%c0_23, %c0_24, %c0_25] : memref<4x8x128xf32, #tpu.memory_space<vmem>>, vector<4x8x128xf32>
      tpu.vector_store %arg7[%c0_23, %c0_24, %c0_25], %39 {strides = array<i32>} : memref<4x8x128xf32, #tpu.memory_space<vmem>>, vector<4x8x128xf32>,
      %c0_26 = arith.constant 0 : index
      %c0_27 = arith.constant 0 : index
      %c0_28 = arith.constant 0 : index
      %41 = vector.load %arg8[%c0_26, %c0_27, %c0_28] : memref<4x8x128xf32, #tpu.memory_space<vmem>>, vector<4x8x128xf32>
      %42 = arith.addf %41, %20 : vector<4x8x128xf32>
      %c0_29 = arith.constant 0 : index
      %c0_30 = arith.constant 0 : index
      %c0_31 = arith.constant 0 : index
      %43 = vector.load %arg8[%c0_29, %c0_30, %c0_31] : memref<4x8x128xf32, #tpu.memory_space<vmem>>, vector<4x8x128xf32>
      tpu.vector_store %arg8[%c0_29, %c0_30, %c0_31], %42 {strides = array<i32>} : memref<4x8x128xf32, #tpu.memory_space<vmem>>, vector<4x8x128xf32>,
    } else {
    }
    %c1_i32 = arith.constant 1 : i32
    %31 = arith.cmpi eq, %arg2, %c1_i32 : i32
    %32 = arith.extui %31 : i1 to i32
    %c0_i32_13 = arith.constant 0 : i32
    %33 = arith.cmpi ne, %32, %c0_i32_13 : i32
    scf.if %33 {
      %c0_14 = arith.constant 0 : index
      %c0_15 = arith.constant 0 : index
      %c0_16 = arith.constant 0 : index
      %34 = vector.load %arg6[%c0_14, %c0_15, %c0_16] : memref<4x8x128xf32, #tpu.memory_space<vmem>>, vector<4x8x128xf32>
      %c0_17 = arith.constant 0 : index
      %c0_18 = arith.constant 0 : index
      %c0_19 = arith.constant 0 : index
      %c0_20 = arith.constant 0 : index
      %35 = vector.load %arg5[%c0_17, %c0_18, %c0_19, %c0_20] : memref<1x12x8x128xf32, #tpu.memory_space<vmem>>, vector<1x4x8x128xf32>
      %36 = vector.shape_cast %35 : vector<1x4x8x128xf32> to vector<4x8x128xf32>
      %37 = vector.shape_cast %34 : vector<4x8x128xf32> to vector<1x4x8x128xf32>
      tpu.vector_store %arg5[%c0_17, %c0_18, %c0_19, %c0_20], %37 {strides = array<i32>} : memref<1x12x8x128xf32, #tpu.memory_space<vmem>>, vector<1x4x8x128xf32>,
      %c0_21 = arith.constant 0 : index
      %c0_22 = arith.constant 0 : index
      %c0_23 = arith.constant 0 : index
      %38 = vector.load %arg7[%c0_21, %c0_22, %c0_23] : memref<4x8x128xf32, #tpu.memory_space<vmem>>, vector<4x8x128xf32>
      %c0_24 = arith.constant 0 : index
      %c4 = arith.constant 4 : index
      %c0_25 = arith.constant 0 : index
      %c0_26 = arith.constant 0 : index
      %39 = vector.load %arg5[%c0_24, %c4, %c0_25, %c0_26] : memref<1x12x8x128xf32, #tpu.memory_space<vmem>>, vector<1x4x8x128xf32>
      %40 = vector.shape_cast %39 : vector<1x4x8x128xf32> to vector<4x8x128xf32>
      %41 = vector.shape_cast %38 : vector<4x8x128xf32> to vector<1x4x8x128xf32>
      tpu.vector_store %arg5[%c0_24, %c4, %c0_25, %c0_26], %41 {strides = array<i32>} : memref<1x12x8x128xf32, #tpu.memory_space<vmem>>, vector<1x4x8x128xf32>,
      %c0_27 = arith.constant 0 : index
      %c0_28 = arith.constant 0 : index
      %c0_29 = arith.constant 0 : index
      %42 = vector.load %arg8[%c0_27, %c0_28, %c0_29] : memref<4x8x128xf32, #tpu.memory_space<vmem>>, vector<4x8x128xf32>
      %c0_30 = arith.constant 0 : index
      %c8 = arith.constant 8 : index
      %c0_31 = arith.constant 0 : index
      %c0_32 = arith.constant 0 : index
      %43 = vector.load %arg5[%c0_30, %c8, %c0_31, %c0_32] : memref<1x12x8x128xf32, #tpu.memory_space<vmem>>, vector<1x4x8x128xf32>
      %44 = vector.shape_cast %43 : vector<1x4x8x128xf32> to vector<4x8x128xf32>
      %45 = vector.shape_cast %42 : vector<4x8x128xf32> to vector<1x4x8x128xf32>
      tpu.vector_store %arg5[%c0_30, %c8, %c0_31, %c0_32], %45 {strides = array<i32>} : memref<1x12x8x128xf32, #tpu.memory_space<vmem>>, vector<1x4x8x128xf32>,
    } else {
    }
    return
  }
  func.func @transform_0(%arg0: i32, %arg1: i32, %arg2: i32) -> (i32, i32, i32, i32) {
    %c2_i32 = arith.constant 2 : i32
    %0 = arith.muli %arg1, %c2_i32 : i32
    %1 = arith.addi %0, %arg2 : i32
    %c0_i32 = arith.constant 0 : i32
    %c0_i32_0 = arith.constant 0 : i32
    %c0_i32_1 = arith.constant 0 : i32
    return %arg0, %c0_i32, %1, %c0_i32_0 : i32, i32, i32, i32
  }
  func.func @transform_1(%arg0: i32, %arg1: i32, %arg2: i32) -> (i32, i32, i32, i32) {
    %c2_i32 = arith.constant 2 : i32
    %0 = arith.muli %arg1, %c2_i32 : i32
    %1 = arith.addi %0, %arg2 : i32
    %c0_i32 = arith.constant 0 : i32
    %c0_i32_0 = arith.constant 0 : i32
    %c0_i32_1 = arith.constant 0 : i32
    return %arg0, %c0_i32, %1, %c0_i32_0 : i32, i32, i32, i32
  }
  func.func @transform_2(%arg0: i32, %arg1: i32, %arg2: i32) -> (i32, i32, i32, i32) {
    %c1_i32 = arith.constant 1 : i32
    %0 = arith.muli %arg0, %c1_i32 : i32
    %1 = arith.addi %0, %arg1 : i32
    %c0_i32 = arith.constant 0 : i32
    %c0_i32_0 = arith.constant 0 : i32
    %c0_i32_1 = arith.constant 0 : i32
    %c0_i32_2 = arith.constant 0 : i32
    return %1, %c0_i32, %c0_i32_0, %c0_i32_1 : i32, i32, i32, i32
  }
}

</mosaic_0001>

<bundles_post_ra>
// kernel: tpu_custom_call.1
= control target key start
LH: loop header
LB: loop body
LE: loop exit
PB: predicated region body
PF: predicated region fallthrough
CT: control target
= control target key end

     0   :  { %7 = vsyncpa [#allocation8], 0  ;;  %s1132_s0 = inlined_call_operand.vmem [shape: f32[2,4,14,128], index: 0, kind: input, shape index: {}]   ;;  %s1133_s1 = inlined_call_operand.vmem [shape: f32[2,4,14,128], index: 1, kind: input, shape index: {}]   ;;  %s1134_s2 = inlined_call_operand.hbm [shape: f32[2,12,8,128], index: 2, kind: output, shape index: {}]  }
   0x1   :  { %9 = vsyncpa [#allocation8 + $0x1], 0  ;;  %s877_s9 = smov 0   ;;  %s879_s10 = smov 0  }
   0x2   :  { %s881_s11 = smov 0   ;;  %s883_s12 = smov 0  }
   0x3   :  { %s885_s13 = smov 0   ;;  %s887_s14 = smov 0  }
   0x4   :  { %s889_s15 = smov 0   ;;  %s891_s16 = smov 0  }
   0x5   :  { %s893_s17 = smov 0   ;;  %s895_s18 = smov 0  }
   0x6 LB: > { %s615_s19 = sadd.s32 4294967295, %s856_s18   ;;  %s616_s20 = sadd.s32 4294967294, %s856_s18   ;;  %s856_s18 = sphi %s895_s18, %s15_s18   ;;  %s852_s17 = sphi %s893_s17, %s1146_s17   ;;  %s848_s16 = sphi %s891_s16, %s1145_s16   ;;  %s844_s15 = sphi %s889_s15, %s1144_s15   ;;  %s840_s14 = sphi %s887_s14, %s1143_s14   ;;  %s836_s13 = sphi %s885_s13, %s1142_s13   ;;  %s832_s12 = sphi %s883_s12, %s1141_s12   ;;  %s828_s11 = sphi %s881_s11, %s1140_s11   ;;  %s824_s10 = sphi %s879_s10, %s1139_s10   ;;  %s820_s9 = sphi %s877_s9, %s1138_s9  }
   0x7   : > { %s27_s21 = sadd.s32 1, %s848_s16  ;;  %s34_s22 = sadd.s32 1, %s852_s17 }
   0x8   : > { %p28_p0 = scmp.ge.s32.totalorder %s27_s21, 2  ;;  %s47_s23 = sadd.s32 1, %s836_s13 }
   0x9   : > { %p54_p1 = scmp.ne.s32.totalorder %s836_s13, %s832_s12  ;;  %p55_p2 = scmp.eq.s32.totalorder %s856_s18, 0 }
   0xa   : > { %s1148_s21 = smov (%p28_p0, %s27_s21), 0  ;;  %s1150_s22 = smov (!%p28_p0, %s34_s22), %s852_s17 }
   0xb   : > { %s43_s24 = ssub.s32 %s848_s16, %s1148_s21  ;;  %p940_p3 = por %p55_p2, %p54_p1 }
   0xc   : > { %p36_p4 = scmp.ge.s32.totalorder %s1150_s22, 2  ;;  %s107_s26 = sadd.s32 1, %s828_s11 }
   0xd   : > { %p117_p5 = scmp.ne.s32.totalorder %s828_s11, %s824_s10  ;;  %p118_p6 = scmp.eq.s32.totalorder %s615_s19, 3 }
   0xe   : > { %s1152_s22 = smov (%p36_p4, %s1150_s22), 0  ;;  %p123_p8 = scmp.ne.s32.totalorder %s824_s10, %s820_s9 }
   0xf   : > { %p949_p7 = por %p118_p6, %p117_p5  ;;  %s42_s28 = ssub.s32 %s852_s17, %s1152_s22 }
  0x10   : > { %p124_p9 = scmp.eq.s32.totalorder %s616_s20, 3  ;;  %s44_s29 = sor.u32 %s43_s24, %s42_s28 }
  0x11   : > { %p105_p10 = scmp.eq.s32.totalorder %s42_s28, 0  ;;  %p45_p11 = scmp.eq.s32.totalorder %s44_s29, 0 }
  0x12   : > { %p957_p12 = por %p124_p9, %p123_p8  ;;  %p618_p13 = scmp.ge.s32.totalorder %s856_s18, 4 }
  0x13   : > { %s962_s3 = scalar_select %p105_p10, %s828_s11, %s107_s26  }
  0x14   : > { %s965_s4 = scalar_select %p45_p11, %s836_s13, %s47_s23  }
  0x15   : > { %140 = sbr.rel (%p618_p13) target bundleno = 44 (0x2c), region = 16 }
  0x1c   : > { %143 = sbr.rel (!%p940_p3) target bundleno = 36 (0x24), region = 20  ;;  %s145_s5 = sand.u32 (%p940_p3), 1, %s836_s13  }
  0x1d   : > { %s620_s6 = sshll.u32 (%p940_p3), %s852_s17, 3  ;;  %s619_s7 = sshll.u32 (%p940_p3), %s145_s5, 5 }
  0x1e   : > { %s151_s8 = sadd.s32 (%p940_p3), %s848_s16, %s620_s6  ;;  %s147_s23 = scalar_lea.vmem (%p940_p3), [#allocation5], %s619_s7 }
  0x1f   : > { %s621_s19 = sshll.u32 (%p940_p3), %s151_s8, 3 }
  0x20   : > { %s153_s26 = scalar_lea.vmem (%p940_p3), %s1132_s0, %s621_s19 }
  0x21   : > { %v187_v0 = vld [vmem:[%s153_s26] sm:$0xff] (%p940_p3)  ;;  %v189_v1 = vld [vmem:[%s153_s26 + $0x10] sm:$0xff] (%p940_p3) }
  0x22   : > { %v191_v2 = vld [vmem:[%s153_s26 + $0x20] sm:$0xff] (%p940_p3)  ;;  %188 = vst [vmem:[%s147_s23] sm:$0xff] (%p940_p3), %v187_v0  ;;  %190 = vst [vmem:[%s147_s23 + $0x8] sm:$0xff] (%p940_p3), %v189_v1  ;;  %v193_v3 = vld [vmem:[%s153_s26 + $0x30] sm:$0xff] (%p940_p3) }
  0x23   : > { %192 = vst [vmem:[%s147_s23 + $0x10] sm:$0xff] %v191_v2  ;;  %194 = vst [vmem:[%s147_s23 + $0x18] sm:$0xff] %v193_v3 }
  0x24 PF: > { %200 = sbr.rel (!%p940_p3) target bundleno = 44 (0x2c), region = 58  ;;  %s202_s28 = sand.u32 (%p940_p3), 1, %s836_s13  }
  0x25   : > { %s623_s29 = sshll.u32 (%p940_p3), %s852_s17, 3  ;;  %s622_s5 = sshll.u32 (%p940_p3), %s202_s28, 5 }
  0x26   : > { %s208_s6 = sadd.s32 (%p940_p3), %s848_s16, %s623_s29  ;;  %s204_s24 = scalar_lea.vmem (%p940_p3), [#allocation6], %s622_s5 }
  0x27   : > { %s624_s8 = sshll.u32 (%p940_p3), %s208_s6, 3 }
  0x28   : > { %s210_s7 = scalar_lea.vmem (%p940_p3), %s1133_s1, %s624_s8 }
  0x29   : > { %v244_v4 = vld [vmem:[%s210_s7] sm:$0xff] (%p940_p3)  ;;  %v246_v5 = vld [vmem:[%s210_s7 + $0x10] sm:$0xff] (%p940_p3) }
  0x2a   : > { %v248_v6 = vld [vmem:[%s210_s7 + $0x20] sm:$0xff] (%p940_p3)  ;;  %245 = vst [vmem:[%s204_s24] sm:$0xff] (%p940_p3), %v244_v4  ;;  %247 = vst [vmem:[%s204_s24 + $0x8] sm:$0xff] (%p940_p3), %v246_v5  ;;  %v250_v7 = vld [vmem:[%s210_s7 + $0x30] sm:$0xff] (%p940_p3) }
  0x2b   : > { %249 = vst [vmem:[%s204_s24 + $0x10] sm:$0xff] %v248_v6  ;;  %251 = vst [vmem:[%s204_s24 + $0x18] sm:$0xff] %v250_v7 }
  0x2c PF: > { %p625_p0 = scmp.ge.s32.totalorder %s856_s18, 1  ;;  %p256_p1 = scmp.lt.s32.totalorder %s856_s18, 5 }
  0x2e   : > { %p257_p2 = pnand %p625_p0, %p256_p1 }
  0x2f   : > { %s263_s25 = sand.u32 (!%p257_p2), 1, %s832_s12   ;;  %s292_s26 = sand.u32 (!%p257_p2), 1, %s824_s10  }
  0x30   : > { %260 = sbr.rel (%p257_p2) target bundleno = 163 (0xa3), region = 96  ;;  %s626_s23 = sshll.u32 (!%p257_p2), %s263_s25, 5 }
  0x31   : > { %s644_s28 = smul.u32 (!%p257_p2), 96, %s292_s26  ;;  %s265_s29 = scalar_lea.vmem (!%p257_p2), [#allocation5], %s626_s23 }
  0x32   : > { %s272_s5 = scalar_lea.vmem (!%p257_p2), [#allocation6], %s626_s23  ;;  %p628_p3 = scmp.ne.s32.totalorder (!%p257_p2), %s840_s14, 0 }
  0x33   : > { %s990_s6 = scalar_lea.vmem (!%p257_p2), [#allocation7], %s644_s28 }
  0x37   : > { %303 = sbr.rel (%p628_p3) target bundleno = 62 (0x3e), region = 108  ;;  %v858_v8 = vmov (!%p628_p3), 0.0  }
  0x38   : > { %304 = vst [vmem:[#allocation2] sm:$0xff] (!%p628_p3), %v858_v8  ;;  %305 = vst [vmem:[#allocation2 + $0x8] sm:$0xff] (!%p628_p3), %v858_v8 }
  0x39   : > { %306 = vst [vmem:[#allocation2 + $0x10] sm:$0xff] (!%p628_p3), %v858_v8  ;;  %307 = vst [vmem:[#allocation2 + $0x18] sm:$0xff] (!%p628_p3), %v858_v8 }
  0x3a   : > { %308 = vst [vmem:[#allocation3] sm:$0xff] (!%p628_p3), %v858_v8  ;;  %309 = vst [vmem:[#allocation3 + $0x8] sm:$0xff] (!%p628_p3), %v858_v8 }
  0x3b   : > { %310 = vst [vmem:[#allocation3 + $0x10] sm:$0xff] (!%p628_p3), %v858_v8  ;;  %311 = vst [vmem:[#allocation3 + $0x18] sm:$0xff] (!%p628_p3), %v858_v8 }
  0x3c   : > { %312 = vst [vmem:[#allocation4] sm:$0xff] (!%p628_p3), %v858_v8  ;;  %313 = vst [vmem:[#allocation4 + $0x8] sm:$0xff] (!%p628_p3), %v858_v8 }
  0x3d   : > { %314 = vst [vmem:[#allocation4 + $0x10] sm:$0xff] (!%p628_p3), %v858_v8  ;;  %315 = vst [vmem:[#allocation4 + $0x18] sm:$0xff] (!%p628_p3), %v858_v8 }
  0x3e PF: > { %v316_v9 = vld [vmem:[%s265_s29] sm:$0xff]  ;;  %v317_v10 = vld [vmem:[%s265_s29 + $0x8] sm:$0xff]  ;;  %v318_v11 = vld [vmem:[%s265_s29 + $0x10] sm:$0xff]  ;;  %s629_s12 = sshll.u32 %s840_s14, 10 }
  0x3f   : > { %v319_v12 = vld [vmem:[%s265_s29 + $0x18] sm:$0xff]  ;;  %v320_v13 = vmax.f32 %v316_v9, %v317_v10  ;;  %v994_v14 = vld [vmem:[%s272_s5] sm:$0xff]  ;;  %v996_v15 = vld [vmem:[%s272_s5 + $0x8] sm:$0xff]  ;;  %s1000_s8 = sadd.s32 1024, %s629_s12 }
  0x40   : > { %v321_v16 = vmax.f32 %v318_v11, %v319_v12  ;;  %v1002_v17 = vld [vmem:[%s272_s5 + $0x10] sm:$0xff]  ;;  %v1004_v18 = vld [vmem:[%s272_s5 + $0x18] sm:$0xff]  ;;  %p630_p4 = scmp.le.s32.totalorder %s1000_s8, 1792 }
  0x41   : > { %v358_v43 = vlaneseq (!%p630_p4)  ;;  %v363_v45 = vstv (!%p630_p4), %s629_s12  ;;  %v377_v50 = vld [vmem:[#allocation2] sm:$0xff] (!%p630_p4)  ;;  %v378_v51 = vld [vmem:[#allocation2 + $0x8] sm:$0xff] (!%p630_p4)  ;;  %v379_v52 = vld [vmem:[#allocation2 + $0x10] sm:$0xff] (!%p630_p4) }
  0x42   : > { %v322_v19 = vmax.f32 %v320_v13, %v321_v16  ;;  %v393_v53 = vld [vmem:[#allocation3] sm:$0xff] (!%p630_p4)  ;;  %v380_v58 = vld [vmem:[#allocation2 + $0x18] sm:$0xff] (!%p630_p4)  ;;  %v394_v59 = vld [vmem:[#allocation3 + $0x8] sm:$0xff] (!%p630_p4) }
  0x43   : > { %v359_v44 = vshrl.u32 (!%p630_p4), %v358_v43, 7  ;;  %v361_v46 = vand.u32 (!%p630_p4), 127, %v358_v43  ;;  %v395_v0 = vld [vmem:[#allocation3 + $0x10] sm:$0xff] (!%p630_p4)  ;;  %v396_v1 = vld [vmem:[#allocation3 + $0x18] sm:$0xff] (!%p630_p4)  ;;  %v405_v2 = vld [vmem:[#allocation4] sm:$0xff] (!%p630_p4) }
  0x44   : > { %v323_v20 = vsub.f32 %v316_v9, %v322_v19  ;;  %v324_v21 = vsub.f32 %v317_v10, %v322_v19  ;;  %v325_v22 = vsub.f32 %v318_v11, %v322_v19  ;;  %v326_v23 = vsub.f32 %v319_v12, %v322_v19  ;;  %v406_v7 = vld [vmem:[#allocation4 + $0x8] sm:$0xff] (!%p630_p4)  ;;  %v407_v8 = vld [vmem:[#allocation4 + $0x10] sm:$0xff] (!%p630_p4)  ;;  %v408_v9 = vld [vmem:[#allocation4 + $0x18] sm:$0xff] (!%p630_p4) }
  0x45   : > { %v362_v47 = vmul.u32 (!%p630_p4), 128, %v359_v44 }
  0x46   : > { %v327_v24 = vmul.f32 1.442695, %v323_v20  ;;  %v329_v25 = vmul.f32 1.442695, %v324_v21  ;;  %v331_v26 = vmul.f32 1.442695, %v325_v22 }
  0x47   : > { %v333_v27 = vmul.f32 1.442695, %v326_v23  ;;  %v364_v48 = vadd.s32 (!%p630_p4), %v363_v45, %v362_v47 }
  0x48   : > { %736 = vpow2.f32 %v327_v24 }
  0x49   : > { %738 = vpow2.f32 %v329_v25  ;;  %v365_v49 = vadd.s32 (!%p630_p4), %v364_v48, %v361_v46 }
  0x4a   : > { %740 = vpow2.f32 %v331_v26 }
  0x4b   : > { %742 = vpow2.f32 %v333_v27  ;;  %vm366_vm0 = vcmp.lt.s32.totalorder (!%p630_p4), %v365_v49, 1792 }
  0x4c   : > { %v373_v55 = vsel (!%p630_p4), %vm366_vm0, %v994_v14, 0.0  ;;  %v374_v57 = vsel (!%p630_p4), %vm366_vm0, %v996_v15, 0.0  ;;  %v375_v63 = vsel (!%p630_p4), %vm366_vm0, %v1002_v17, 0.0  ;;  %v376_v5 = vsel (!%p630_p4), %vm366_vm0, %v1004_v18, 0.0 }
  0x4d   : > { %v409_v21 = vadd.f32 (!%p630_p4), %v405_v2, %v373_v55  ;;  %v410_v23 = vadd.f32 (!%p630_p4), %v406_v7, %v374_v57  ;;  %v411_v24 = vadd.f32 (!%p630_p4), %v407_v8, %v375_v63  ;;  %v412_v25 = vadd.f32 (!%p630_p4), %v408_v9, %v376_v5 }
  0x4f   : > { %413 = vst [vmem:[#allocation4] sm:$0xff] (!%p630_p4), %v409_v21  ;;  %414 = vst [vmem:[#allocation4 + $0x8] sm:$0xff] (!%p630_p4), %v410_v23 }
  0x50   : > { %415 = vst [vmem:[#allocation4 + $0x10] sm:$0xff] (!%p630_p4), %v411_v24  ;;  %416 = vst [vmem:[#allocation4 + $0x18] sm:$0xff] (!%p630_p4), %v412_v25 }
  0x52   : > { %v737_v28 = vpop.eup %736 }
  0x53   : > { %v739_v29 = vpop.eup %738 }
  0x54   : > { %v741_v30 = vpop.eup %740  ;;  %v335_v31 = vadd.f32 %v739_v29, %v737_v28 }
  0x55   : > { %v743_v32 = vpop.eup %742 }
  0x56   : > { %v336_v33 = vadd.f32 %v741_v30, %v335_v31 }
  0x58   : > { %v337_v34 = vadd.f32 %v743_v32, %v336_v33 }
  0x5a   : > { %744 = vrcp.f32 %v337_v34 }
  0x64   : > { %v745_v35 = vpop.eup %744 }
  0x65   : > { %v339_v36 = vmul.f32 %v745_v35, %v337_v34  ;;  %357 = sbr.rel (%p630_p4) target bundleno = 117 (0x75), region = 112 }
  0x67   : > { %v340_v37 = vsub.f32 2.0, %v339_v36 }
  0x69   : > { %v341_v38 = vmul.f32 %v745_v35, %v340_v37 }
  0x6b   : > { %v1006_v39 = vmul.f32 %v737_v28, %v341_v38  ;;  %v1008_v40 = vmul.f32 %v739_v29, %v341_v38  ;;  %v1010_v41 = vmul.f32 %v741_v30, %v341_v38  ;;  %v1012_v42 = vmul.f32 %v743_v32, %v341_v38 }
  0x6d   : > { %v369_v54 = vsel %vm366_vm0, %v1006_v39, 0.0  ;;  %v370_v56 = vsel %vm366_vm0, %v1008_v40, 0.0  ;;  %v371_v62 = vsel %vm366_vm0, %v1010_v41, 0.0  ;;  %v372_v4 = vsel %vm366_vm0, %v1012_v42, 0.0 }
  0x6e   : > { %v381_v60 = vmul.f32 %v373_v55, %v369_v54  ;;  %v382_v61 = vmul.f32 %v374_v57, %v370_v56  ;;  %v383_v3 = vmul.f32 %v375_v63, %v371_v62  ;;  %v397_v6 = vadd.f32 %v393_v53, %v369_v54 }
  0x6f   : > { %v384_v12 = vmul.f32 %v376_v5, %v372_v4  ;;  %v398_v13 = vadd.f32 %v394_v59, %v370_v56  ;;  %v399_v19 = vadd.f32 %v395_v0, %v371_v62  ;;  %v400_v20 = vadd.f32 %v396_v1, %v372_v4 }
  0x70   : > { %v385_v10 = vadd.f32 %v381_v60, %v377_v50  ;;  %v386_v11 = vadd.f32 %v382_v61, %v378_v51  ;;  %v387_v16 = vadd.f32 %v383_v3, %v379_v52  ;;  %401 = vst [vmem:[#allocation3] sm:$0xff] %v397_v6 }
  0x71   : > { %v388_v22 = vadd.f32 %v384_v12, %v380_v58  ;;  %402 = vst [vmem:[#allocation3 + $0x8] sm:$0xff] %v398_v13  ;;  %403 = vst [vmem:[#allocation3 + $0x10] sm:$0xff] %v399_v19 }
  0x72   : > { %389 = vst [vmem:[#allocation2] sm:$0xff] %v385_v10  ;;  %390 = vst [vmem:[#allocation2 + $0x8] sm:$0xff] %v386_v11 }
  0x73   : > { %391 = vst [vmem:[#allocation2 + $0x10] sm:$0xff] %v387_v16  ;;  %404 = vst [vmem:[#allocation3 + $0x18] sm:$0xff] %v400_v20 }
  0x74   : > { %392 = vst [vmem:[#allocation2 + $0x18] sm:$0xff] %v388_v22 }
  0x75 PF: > { %p631_p5 = scmp.gt.s32.totalorder %s1000_s8, 1792 }
  0x76   : > { %v425_v27 = vmul.f32 (!%p631_p5), %v994_v14, %v1006_v39  ;;  %v426_v29 = vmul.f32 (!%p631_p5), %v996_v15, %v1008_v40  ;;  %v427_v31 = vmul.f32 (!%p631_p5), %v1002_v17, %v1010_v41  ;;  %v428_v32 = vmul.f32 (!%p631_p5), %v1004_v18, %v1012_v42  ;;  %v449_v46 = vld [vmem:[#allocation4] sm:$0xff] (!%p631_p5)  ;;  %v450_v51 = vld [vmem:[#allocation4 + $0x8] sm:$0xff] (!%p631_p5)  ;;  %v451_v52 = vld [vmem:[#allocation4 + $0x10] sm:$0xff] (!%p631_p5) }
  0x77   : > { %420 = sbr.rel (%p631_p5) target bundleno = 127 (0x7f), region = 116  ;;  %v437_v34 = vld [vmem:[#allocation3] sm:$0xff] (!%p631_p5)  ;;  %v452_v53 = vld [vmem:[#allocation4 + $0x18] sm:$0xff] (!%p631_p5)  ;;  %v453_v54 = vadd.f32 (!%p631_p5), %v449_v46, %v994_v14  ;;  %v454_v55 = vadd.f32 (!%p631_p5), %v450_v51, %v996_v15  ;;  %v455_v56 = vadd.f32 (!%p631_p5), %v451_v52, %v1002_v17 }
  0x78   : > { %v438_v35 = vld [vmem:[#allocation3 + $0x8] sm:$0xff] (!%p631_p5)  ;;  %v439_v44 = vld [vmem:[#allocation3 + $0x10] sm:$0xff] (!%p631_p5)  ;;  %v441_v47 = vadd.f32 (!%p631_p5), %v437_v34, %v1006_v39  ;;  %v456_v39 = vadd.f32 (!%p631_p5), %v452_v53, %v1004_v18 }
  0x79   : > { %v421_v26 = vld [vmem:[#allocation2] sm:$0xff] (!%p631_p5)  ;;  %v422_v28 = vld [vmem:[#allocation2 + $0x8] sm:$0xff] (!%p631_p5)  ;;  %v442_v48 = vadd.f32 (!%p631_p5), %v438_v35, %v1008_v40  ;;  %v443_v49 = vadd.f32 (!%p631_p5), %v439_v44, %v1010_v41  ;;  %457 = vst [vmem:[#allocation4] sm:$0xff] (!%p631_p5), %v453_v54  ;;  %458 = vst [vmem:[#allocation4 + $0x8] sm:$0xff] (!%p631_p5), %v454_v55 }
  0x7a   : > { %v423_v30 = vld [vmem:[#allocation2 + $0x10] sm:$0xff] (!%p631_p5)  ;;  %v429_v36 = vadd.f32 (!%p631_p5), %v425_v27, %v421_v26  ;;  %v430_v37 = vadd.f32 (!%p631_p5), %v426_v29, %v422_v28  ;;  %v440_v45 = vld [vmem:[#allocation3 + $0x18] sm:$0xff] (!%p631_p5)  ;;  %445 = vst [vmem:[#allocation3] sm:$0xff] (!%p631_p5), %v441_v47  ;;  %459 = vst [vmem:[#allocation4 + $0x10] sm:$0xff] (!%p631_p5), %v455_v56 }
  0x7b   : > { %v424_v33 = vld [vmem:[#allocation2 + $0x18] sm:$0xff] (!%p631_p5)  ;;  %v431_v38 = vadd.f32 (!%p631_p5), %v427_v31, %v423_v30  ;;  %v444_v50 = vadd.f32 (!%p631_p5), %v440_v45, %v1012_v42  ;;  %446 = vst [vmem:[#allocation3 + $0x8] sm:$0xff] (!%p631_p5), %v442_v48  ;;  %447 = vst [vmem:[#allocation3 + $0x10] sm:$0xff] (!%p631_p5), %v443_v49 }
  0x7c   : > { %v432_v43 = vadd.f32 (!%p631_p5), %v428_v32, %v424_v33  ;;  %433 = vst [vmem:[#allocation2] sm:$0xff] (!%p631_p5), %v429_v36  ;;  %434 = vst [vmem:[#allocation2 + $0x8] sm:$0xff] (!%p631_p5), %v430_v37 }
  0x7d   : > { %435 = vst [vmem:[#allocation2 + $0x10] sm:$0xff] (!%p631_p5), %v431_v38  ;;  %448 = vst [vmem:[#allocation3 + $0x18] sm:$0xff] (!%p631_p5), %v444_v50 }
  0x7e   : > { %436 = vst [vmem:[#allocation2 + $0x18] sm:$0xff] %v432_v43  ;;  %460 = vst [vmem:[#allocation4 + $0x18] sm:$0xff] %v456_v39 }
  0x7f PF: > { %p632_p6 = scmp.ne.s32.totalorder %s840_s14, 1 }
  0x81   : > { %464 = sbr.rel (%p632_p6) target bundleno = 137 (0x89), region = 120  ;;  %v482_v58 = vld [vmem:[#allocation4] sm:$0xff] (!%p632_p6)  ;;  %v483_v59 = vld [vmem:[#allocation4 + $0x8] sm:$0xff] (!%p632_p6) }
  0x82   : > { %v473_v18 = vld [vmem:[#allocation3] sm:$0xff] (!%p632_p6)  ;;  %637 = vst [vmem:[%s990_s6 + $0x40] sm:$0xff] (!%p632_p6), %v482_v58  ;;  %v484_v60 = vld [vmem:[#allocation4 + $0x10] sm:$0xff] (!%p632_p6)  ;;  %638 = vst [vmem:[%s990_s6 + $0x48] sm:$0xff] (!%p632_p6), %v483_v59 }
  0x83   : > { %v474_v41 = vld [vmem:[#allocation3 + $0x8] sm:$0xff] (!%p632_p6)  ;;  %633 = vst [vmem:[%s990_s6 + $0x20] sm:$0xff] (!%p632_p6), %v473_v18  ;;  %v475_v42 = vld [vmem:[#allocation3 + $0x10] sm:$0xff] (!%p632_p6)  ;;  %639 = vst [vmem:[%s990_s6 + $0x50] sm:$0xff] (!%p632_p6), %v484_v60 }
  0x84   : > { %v465_v40 = vld [vmem:[#allocation2] sm:$0xff] (!%p632_p6)  ;;  %v466_v14 = vld [vmem:[#allocation2 + $0x8] sm:$0xff] (!%p632_p6)  ;;  %634 = vst [vmem:[%s990_s6 + $0x28] sm:$0xff] (!%p632_p6), %v474_v41  ;;  %635 = vst [vmem:[%s990_s6 + $0x30] sm:$0xff] (!%p632_p6), %v475_v42 }
  0x85   : > { %v467_v15 = vld [vmem:[#allocation2 + $0x10] sm:$0xff] (!%p632_p6)  ;;  %469 = vst [vmem:[%s990_s6] sm:$0xff] (!%p632_p6), %v465_v40  ;;  %470 = vst [vmem:[%s990_s6 + $0x8] sm:$0xff] (!%p632_p6), %v466_v14  ;;  %v468_v17 = vld [vmem:[#allocation2 + $0x18] sm:$0xff] (!%p632_p6) }
  0x86   : > { %471 = vst [vmem:[%s990_s6 + $0x10] sm:$0xff] (!%p632_p6), %v467_v15  ;;  %472 = vst [vmem:[%s990_s6 + $0x18] sm:$0xff] (!%p632_p6), %v468_v17  ;;  %v476_v57 = vld [vmem:[#allocation3 + $0x18] sm:$0xff] (!%p632_p6) }
  0x87   : > { %636 = vst [vmem:[%s990_s6 + $0x38] sm:$0xff] (!%p632_p6), %v476_v57  ;;  %v485_v61 = vld [vmem:[#allocation4 + $0x18] sm:$0xff] (!%p632_p6) }
  0x88   : > { %640 = vst [vmem:[%s990_s6 + $0x58] sm:$0xff] %v485_v61 }
  0x89 PF: > { %s645_s14 = smul.u32 1536, %s844_s15  ;;  %s506_s19 = sshll.u32 %s990_s6, 4  ;;  %s1070_s19 = int_to_ptr.vmem [resolvable:$true] %s506_s19 }
  0x8a   : > { %s1074_s25 = scalar_lea.sflag [#allocation8], %s292_s26  ;;  %s746_s23 = scalar_lea.vmem %s1070_s19, 1536 }
  0x8b   : > { %s1068_s24 = scalar_lea.hbm %s1134_s2, %s645_s14  ;;  %p747_p8 = scmp.ne.s32.totalorder %s1070_s19, %s746_s23 }
  0x8c   : > { %s859_s15 = smov [#allocation7]  }
  0x8d   : > { %p748_p9 = pnand %p747_p8, %p949_p7  ;;  %s750_s28 = sshll.u32 %s859_s15, 4  ;;  %s751_s28 = int_to_ptr.vmem [resolvable:$false] %s750_s28 }
  0x8e   : > { %s752_s29 = scalar_lea.vmem %s751_s28, 3072  ;;  %p753_p11 = scmp.lt.s32.totalorder %s1070_s19, %s751_s28 }
  0x8f   : > { %p749_p10 = pneg %p748_p9  ;;  %p754_p13 = scmp.lt.s32.totalorder %s752_s29, %s746_s23 }
  0x91   : > { %p755_p0 = por %p754_p13, %p753_p11 }
  0x93   : > { %p756_p1 = pnand %p755_p0, %p749_p10 }
  0x95   : > { %759 = shalt.err (!%p756_p1)
}
  0x96   : > { %s760_s26 = scalar_lea.hbm %s1068_s24, 1536  ;;  %s764_s12 = scalar_lea.hbm %s1134_s2, 3072 }
  0x97   : > { %p761_p2 = scmp.ne.s32.totalorder %s1068_s24, %s760_s26  ;;  %p765_p5 = scmp.lt.u32.totalorder %s1068_s24, %s1134_s2 }
  0x98   : > { %p766_p6 = scmp.lt.u32.totalorder %s764_s12, %s760_s26  ;;  %p768_p9 = scmp.lt.u32.totalorder %s760_s26, %s1068_s24 }
  0x99   : > { %p762_p3 = pnand %p761_p2, %p949_p7 }
  0x9a   : > { %p767_p8 = por %p766_p6, %p765_p5 }
  0x9b   : > { %p763_p4 = pneg %p762_p3 }
  0x9c   : > { %p769_p10 = por %p768_p9, %p767_p8 }
  0x9e   : > { %p770_p11 = pnand %p769_p10, %p763_p4 }
  0xa0   : > { %773 = shalt.err (!%p770_p11)
}
  0xa1   : > { %s860_s20 = smov 128   ;;  %s861_s7 = smov 8  }
  0xa2   : > { %646 = dma.vmem_to_hbm [thread:$0]  (%p949_p7), %s1070_s19, 1536, %s1068_s24, %s1074_s25, %s860_s20, %s860_s20, %s861_s7  }
  0xa3 PF: > { %p652_p13 = scmp.ge.s32.totalorder %s856_s18, 2  ;;  %s521_s23 = sand.u32 1, %s820_s9  }
  0xa4   : > { %s522_s15 = scalar_lea.sflag [#allocation8], %s521_s23 }
  0xa5   : > { %p649_p0 = pnand %p652_p13, %p957_p12 }
  0xa7   : > { %815 = dma.done.wait (!%p649_p0), %s522_s15, 1536  }
  0xa8   : > { %817 = vsyncadd (!%p649_p0), %s522_s15, 4294965760  ;;  %s15_s18 = sadd.s32 1, %s856_s18   ;;  %s1138_s9 = smov %s824_s10 }
  0xa9   : > { %p12_p1 = scmp.ge.s32.totalorder %s15_s18, 6   ;;  %s1139_s10 = smov %s828_s11 }
  0xaa   : > { %s1140_s11 = smov %s962_s3  ;;  %s1141_s12 = smov %s836_s13 }
  0xab   : > { %s1142_s13 = smov %s965_s4  ;;  %s1143_s14 = smov %s848_s16 }
  0xac   : > { %s1144_s15 = smov %s852_s17  ;;  %s1145_s16 = smov %s1148_s21 }
  0xad   : > { %s1146_s17 = smov %s1152_s22  ;;  %14 = sbr.rel (!%p12_p1) target bundleno = 6 (0x6), region = 170 }
  0xb4   :  { %527 = vsyncpa [#allocation8], 1 }
  0xb5   :  { %529 = vsyncpa [#allocation8 + $0x1], 1 }

</bundles_post_ra>
